<compile_context>
chip_gen: v7x
topology: tpu7x:2x2x1
jax: 0.10.0
libtpu: 0.0.40
codegen_flags: <defaults>
</compile_context>

<pallas_src>
import jax
import jax.numpy as jnp
import numpy as np
from jax.experimental import pallas as pl
from jax.experimental.pallas import tpu as pltpu

# Lanczos (g=7, n=9) coefficients; valid (accurate to ~1e-5 in f32) for
# x >= 0.5 — counts are >= 1 so no reflection branch is needed.
_LANCZOS_C = (
    0.99999999999980993,
    676.5203681218851,
    -1259.1392167224028,
    771.32342877765313,
    -176.61502916214059,
    12.507343278686905,
    -0.13857109526572012,
    9.9843695780195716e-6,
    1.5056327351493116e-7,
)
_HALF_LOG_2PI = 0.9189385332046727  # 0.5 * log(2*pi)


def _lanczos_rational_coeffs():
    """Convert C0 + sum_i C_i/(x+i-1) into a single rational P(x)/Q(x).

    Q(x) = prod_{k=0}^{7} (x + k);  P = C0*Q + sum_k C_{k+1} * Q/(x+k).
    Computed once on the host in float64; coefficients are highest-degree first.
    """
    factors = [np.poly1d([1.0, float(k)]) for k in range(8)]
    q = np.poly1d([1.0])
    for f in factors:
        q = q * f
    p = _LANCZOS_C[0] * q
    for k in range(8):
        r = np.poly1d([1.0])
        for j in range(8):
            if j != k:
                r = r * factors[j]
        p = p + _LANCZOS_C[k + 1] * r
    return tuple(float(c) for c in p.coeffs), tuple(float(c) for c in q.coeffs)


_P_COEFFS, _Q_COEFFS = _lanczos_rational_coeffs()  # both degree 8 (9 coeffs)
assert len(_P_COEFFS) == 9 and len(_Q_COEFFS) == 9
assert _Q_COEFFS[-1] == 0.0  # Q has a factor of x


def _horner(coeffs, x):
    acc = coeffs[0] * x + coeffs[1]
    for c in coeffs[2:]:
        acc = acc * x + c
    return acc


def _lgamma(x):
    """lgamma(x) for 0.5 <= x <~ 6e4 using one divide + two logs (Pallas-safe).

    TODO(synk): Q(x) ~ x^8 overflows f32 for x > ~6e4; huge counts would need a
    Stirling branch, and torch.lgamma's x < 0.5 reflection (never hit by count
    data) is omitted.
    """
    p = _horner(_P_COEFFS, x)
    q = _horner(_Q_COEFFS[:-1], x) * x   # fold the trailing zero coefficient
    t = x + 6.5                          # x + g - 0.5, g = 7
    return _HALF_LOG_2PI + (x - 0.5) * jnp.log(t) - t + jnp.log(p / q)


def _poisson_nll_kernel(log_rate_ref, count_ref, out_ref):
    lr = log_rate_ref[...].astype(jnp.float32)
    x = count_ref[...].astype(jnp.float32)   # original count (lgamma argument)
    c = x - 1.0                              # "count = count - 1" in the module
    # -log_likelihood = exp(lr) - c*lr + lgamma(c + 1) = exp(lr) - c*lr + lgamma(x)
    out = jnp.exp(lr) - c * lr + _lgamma(x)
    out_ref[...] = out.astype(out_ref.dtype)


def _round_up(v, m):
    return ((v + m - 1) // m) * m


@jax.jit
def poisson_log_likelihood(log_rate, count):
    """Pallas TPU forward of PoissonLogLikelihood. Returns -log_likelihood."""
    assert log_rate.shape == count.shape
    orig_shape = log_rate.shape
    out_dtype = log_rate.dtype

    lane = 128
    lr = log_rate.reshape(-1)
    cn = count.reshape(-1)
    n = lr.shape[0]

    n_pad = _round_up(n, lane)
    if n_pad != n:
        # Rare fallback (element count not a multiple of 128): this is a real
        # HBM copy, but only taken then. Benign values keep the tail finite.
        lr = jnp.pad(lr, (0, n_pad - n))
        cn = jnp.pad(cn, (0, n_pad - n), constant_values=1)

    rows = n_pad // lane
    lr2 = lr.reshape(rows, lane)
    cn2 = cn.reshape(rows, lane)

    # Block sizing: up to 1024 rows (512 KiB f32 per block -> ~3 MiB total with
    # double-buffering of 3 arrays), but keep >= 2 grid steps whenever possible
    # so the "parallel" grid axis can shard across v7x's two TensorCores.
    max_block_rows = 1024
    if rows <= 8:
        block_rows = rows  # full extent (legal even if not a multiple of 8)
    else:
        block_rows = min(max_block_rows, _round_up((rows + 1) // 2, 8))
    grid = (pl.cdiv(rows, block_rows),)

    spec = pl.BlockSpec((block_rows, lane), lambda i: (i, 0))

    out2 = pl.pallas_call(
        _poisson_nll_kernel,
        out_shape=jax.ShapeDtypeStruct((rows, lane), out_dtype),
        grid_spec=pltpu.PrefetchScalarGridSpec(
            num_scalar_prefetch=0,
            grid=grid,
            in_specs=[spec, spec],
            out_specs=spec,
        ),
        compiler_params=pltpu.CompilerParams(
            dimension_semantics=("parallel",)),
    )(lr2, cn2)

    out = out2.reshape(-1)
    if n_pad != n:
        out = out[:n]
    return out.reshape(orig_shape)


def _reference(log_rate, count):
    """Pure-JAX reference matching the PyTorch module."""
    count = count - 1.0
    log_factorial = jax.scipy.special.gammaln(count + 1.0)
    log_likelihood = -jnp.exp(log_rate) + count * log_rate - log_factorial
    return -log_likelihood


if __name__ == "__main__":
    key = jax.random.PRNGKey(0)
    k1, k2 = jax.random.split(key)

    # Small shapes consistent with a counts model: batch=2, classes=4, 16x16
    shape = (2, 4, 16, 16)
    log_rate = jax.random.normal(k1, shape, dtype=jnp.float32) * 0.5
    # counts >= 1 (integer-valued, stored as float)
    count = jax.random.randint(k2, shape, minval=1, maxval=10).astype(jnp.float32)

    out = poisson_log_likelihood(log_rate, count)
    out = jax.block_until_ready(out)

    ref = _reference(log_rate, count)
    np.testing.assert_allclose(np.asarray(out), np.asarray(ref),
                               rtol=1e-4, atol=1e-4)
    print("KERNEL_OK")
</pallas_src>

<mosaic_0001>
module attributes {stable_mosaic.version = 11 : i64} {
  func.func @_poisson_nll_kernel(%arg0: i32, %arg1: memref<8x128xf32, #tpu.memory_space<vmem>>, %arg2: memref<8x128xf32, #tpu.memory_space<vmem>>, %arg3: memref<8x128xf32, #tpu.memory_space<vmem>>) attributes {dimension_semantics = [#tpu.dimension_semantics<parallel>], iteration_bounds = array<i64: 2>, scalar_prefetch = 0 : i64, scratch_operands = 0 : i64, tpu.core_type = #tpu.core_type<tc>, window_params = [{transform_indices = @transform_0, window_bounds = array<i64: 8, 128>}, {transform_indices = @transform_1, window_bounds = array<i64: 8, 128>}, {transform_indices = @transform_2, window_bounds = array<i64: 8, 128>}]} {
    %c0 = arith.constant 0 : index
    %c0_0 = arith.constant 0 : index
    %0 = vector.load %arg1[%c0, %c0_0] : memref<8x128xf32, #tpu.memory_space<vmem>>, vector<8x128xf32>
    %c0_1 = arith.constant 0 : index
    %c0_2 = arith.constant 0 : index
    %1 = vector.load %arg2[%c0_1, %c0_2] : memref<8x128xf32, #tpu.memory_space<vmem>>, vector<8x128xf32>
    %cst = arith.constant 1.000000e+00 : f32
    %2 = vector.broadcast %cst : f32 to vector<8x128xf32>
    %3 = arith.subf %1, %2 : vector<8x128xf32>
    %4 = math.exp %0 : vector<8x128xf32>
    %5 = arith.mulf %3, %0 : vector<8x128xf32>
    %6 = arith.subf %4, %5 : vector<8x128xf32>
    %cst_3 = arith.constant 1.000000e+00 : f32
    %7 = vector.broadcast %cst_3 : f32 to vector<8x128xf32>
    %8 = arith.mulf %7, %1 : vector<8x128xf32>
    %cst_4 = arith.constant 52.4583321 : f32
    %9 = vector.broadcast %cst_4 : f32 to vector<8x128xf32>
    %10 = arith.addf %8, %9 : vector<8x128xf32>
    %11 = arith.mulf %10, %1 : vector<8x128xf32>
    %cst_5 = arith.constant 1203.83423 : f32
    %12 = vector.broadcast %cst_5 : f32 to vector<8x128xf32>
    %13 = arith.addf %11, %12 : vector<8x128xf32>
    %14 = arith.mulf %13, %1 : vector<8x128xf32>
    %cst_6 = arith.constant 15784.8809 : f32
    %15 = vector.broadcast %cst_6 : f32 to vector<8x128xf32>
    %16 = arith.addf %14, %15 : vector<8x128xf32>
    %17 = arith.mulf %16, %1 : vector<8x128xf32>
    %cst_7 = arith.constant 129347.258 : f32
    %18 = vector.broadcast %cst_7 : f32 to vector<8x128xf32>
    %19 = arith.addf %17, %18 : vector<8x128xf32>
    %20 = arith.mulf %19, %1 : vector<8x128xf32>
    %cst_8 = arith.constant 678289.688 : f32
    %21 = vector.broadcast %cst_8 : f32 to vector<8x128xf32>
    %22 = arith.addf %20, %21 : vector<8x128xf32>
    %23 = arith.mulf %22, %1 : vector<8x128xf32>
    %cst_9 = arith.constant 2222880.5 : f32
    %24 = vector.broadcast %cst_9 : f32 to vector<8x128xf32>
    %25 = arith.addf %23, %24 : vector<8x128xf32>
    %26 = arith.mulf %25, %1 : vector<8x128xf32>
    %cst_10 = arith.constant 0x4A7E0D50 : f32
    %27 = vector.broadcast %cst_10 : f32 to vector<8x128xf32>
    %28 = arith.addf %26, %27 : vector<8x128xf32>
    %29 = arith.mulf %28, %1 : vector<8x128xf32>
    %cst_11 = arith.constant 3409662.75 : f32
    %30 = vector.broadcast %cst_11 : f32 to vector<8x128xf32>
    %31 = arith.addf %29, %30 : vector<8x128xf32>
    %cst_12 = arith.constant 1.000000e+00 : f32
    %32 = vector.broadcast %cst_12 : f32 to vector<8x128xf32>
    %33 = arith.mulf %32, %1 : vector<8x128xf32>
    %cst_13 = arith.constant 2.800000e+01 : f32
    %34 = vector.broadcast %cst_13 : f32 to vector<8x128xf32>
    %35 = arith.addf %33, %34 : vector<8x128xf32>
    %36 = arith.mulf %35, %1 : vector<8x128xf32>
    %cst_14 = arith.constant 3.220000e+02 : f32
    %37 = vector.broadcast %cst_14 : f32 to vector<8x128xf32>
    %38 = arith.addf %36, %37 : vector<8x128xf32>
    %39 = arith.mulf %38, %1 : vector<8x128xf32>
    %cst_15 = arith.constant 1.960000e+03 : f32
    %40 = vector.broadcast %cst_15 : f32 to vector<8x128xf32>
    %41 = arith.addf %39, %40 : vector<8x128xf32>
    %42 = arith.mulf %41, %1 : vector<8x128xf32>
    %cst_16 = arith.constant 6.769000e+03 : f32
    %43 = vector.broadcast %cst_16 : f32 to vector<8x128xf32>
    %44 = arith.addf %42, %43 : vector<8x128xf32>
    %45 = arith.mulf %44, %1 : vector<8x128xf32>
    %cst_17 = arith.constant 1.313200e+04 : f32
    %46 = vector.broadcast %cst_17 : f32 to vector<8x128xf32>
    %47 = arith.addf %45, %46 : vector<8x128xf32>
    %48 = arith.mulf %47, %1 : vector<8x128xf32>
    %cst_18 = arith.constant 1.306800e+04 : f32
    %49 = vector.broadcast %cst_18 : f32 to vector<8x128xf32>
    %50 = arith.addf %48, %49 : vector<8x128xf32>
    %51 = arith.mulf %50, %1 : vector<8x128xf32>
    %cst_19 = arith.constant 5.040000e+03 : f32
    %52 = vector.broadcast %cst_19 : f32 to vector<8x128xf32>
    %53 = arith.addf %51, %52 : vector<8x128xf32>
    %54 = arith.mulf %53, %1 : vector<8x128xf32>
    %cst_20 = arith.constant 6.500000e+00 : f32
    %55 = vector.broadcast %cst_20 : f32 to vector<8x128xf32>
    %56 = arith.addf %1, %55 : vector<8x128xf32>
    %cst_21 = arith.constant 5.000000e-01 : f32
    %57 = vector.broadcast %cst_21 : f32 to vector<8x128xf32>
    %58 = arith.subf %1, %57 : vector<8x128xf32>
    %59 = math.log %56 : vector<8x128xf32>
    %60 = arith.mulf %58, %59 : vector<8x128xf32>
    %cst_22 = arith.constant 0.918938517 : f32
    %61 = vector.broadcast %cst_22 : f32 to vector<8x128xf32>
    %62 = arith.addf %61, %60 : vector<8x128xf32>
    %63 = arith.subf %62, %56 : vector<8x128xf32>
    %64 = arith.divf %31, %54 : vector<8x128xf32>
    %65 = math.log %64 : vector<8x128xf32>
    %66 = arith.addf %63, %65 : vector<8x128xf32>
    %67 = arith.addf %6, %66 : vector<8x128xf32>
    %c0_23 = arith.constant 0 : index
    %c0_24 = arith.constant 0 : index
    %68 = vector.load %arg3[%c0_23, %c0_24] : memref<8x128xf32, #tpu.memory_space<vmem>>, vector<8x128xf32>
    tpu.vector_store %arg3[%c0_23, %c0_24], %67 {strides = array<i32>} : memref<8x128xf32, #tpu.memory_space<vmem>>, vector<8x128xf32>,
    return
  }
  func.func @transform_0(%arg0: i32) -> (i32, i32) {
    %c0_i32 = arith.constant 0 : i32
    %c0_i32_0 = arith.constant 0 : i32
    return %arg0, %c0_i32 : i32, i32
  }
  func.func @transform_1(%arg0: i32) -> (i32, i32) {
    %c0_i32 = arith.constant 0 : i32
    %c0_i32_0 = arith.constant 0 : i32
    return %arg0, %c0_i32 : i32, i32
  }
  func.func @transform_2(%arg0: i32) -> (i32, i32) {
    %c0_i32 = arith.constant 0 : i32
    %c0_i32_0 = arith.constant 0 : i32
    return %arg0, %c0_i32 : i32, i32
  }
}

</mosaic_0001>

<bundles_post_ra>
// kernel: poisson_log_likelihood.1
= control target key start
LH: loop header
LB: loop body
LE: loop exit
PB: predicated region body
PF: predicated region fallthrough
CT: control target
= control target key end

     0   :  { %s322_s9 = smov 0   ;;  %s347_s0 = inlined_call_operand.vmem [shape: f32[16,128], index: 0, kind: input, shape index: {}]   ;;  %s348_s1 = inlined_call_operand.vmem [shape: f32[16,128], index: 1, kind: input, shape index: {}]   ;;  %s349_s2 = inlined_call_operand.vmem [shape: f32[16,128], index: 2, kind: output, shape index: {}]  }
   0x1 LB: > { %s271_s10 = sadd.s32 4294967295, %s305_s9   ;;  %p275_p0 = scmp.ge.s32.totalorder %s305_s9, 1  ;;  %s305_s9 = sphi %s322_s9, %s12_s9  }
   0x2   : > { %p120_p1 = scmp.lt.s32.totalorder %s305_s9, 3 }
   0x4   : > { %p121_p2 = pnand %p275_p0, %p120_p1 }
   0x5   : > { %p144_p3 = scmp.lt.s32.totalorder (!%p121_p2), %s271_s10, 1 }
   0x6   : > { %124 = sbr.rel (%p121_p2) target bundleno = 76 (0x4c), region = 28 }
   0xd   : > { %s351_s10 = smov (!%p144_p3, %s271_s10), 1 }
   0xe   : > { %s330_s11 = sshll.u32 %s351_s10, 3 }
   0xf   : > { %s151_s14 = scalar_lea.vmem %s348_s1, %s330_s11  ;;  %s147_s17 = scalar_lea.vmem %s347_s0, %s330_s11 }
  0x10   : > { %v157_v0 = vld [vmem:[%s151_s14] sm:$0xff]  ;;  %s155_s20 = scalar_lea.vmem %s349_s2, %s330_s11 }
  0x11   : > { %v163_v1 = vadd.f32 52.458332, %v157_v0  ;;  %v178_v2 = vadd.f32 28.0, %v157_v0  ;;  %v192_v23 = vadd.f32 6.5, %v157_v0  ;;  %v156_v30 = vld [vmem:[%s147_s17] sm:$0xff]  ;;  %v280_v35 = vadd.f32 -0.5, %v157_v0 }
  0x12   : > { %v159_v32 = vmul.f32 1.442695, %v156_v30  ;;  %v279_v39 = vadd.f32 -1.0, %v157_v0 }
  0x13   : > { %v164_v3 = vmul.f32 %v163_v1, %v157_v0  ;;  %v179_v4 = vmul.f32 %v178_v2, %v157_v0  ;;  %291 = vlog2.f32 %v192_v23 }
  0x14   : > { %v161_v41 = vmul.f32 %v279_v39, %v156_v30 }
  0x15   : > { %v165_v5 = vadd.f32 1203.8342, %v164_v3  ;;  %v180_v6 = vadd.f32 322.0, %v179_v4 }
  0x17   : > { %v166_v7 = vmul.f32 %v165_v5, %v157_v0  ;;  %v181_v8 = vmul.f32 %v180_v6, %v157_v0 }
  0x19   : > { %v167_v9 = vadd.f32 15784.881, %v166_v7  ;;  %v182_v10 = vadd.f32 1960.0, %v181_v8 }
  0x1b   : > { %v168_v11 = vmul.f32 %v167_v9, %v157_v0  ;;  %v183_v12 = vmul.f32 %v182_v10, %v157_v0 }
  0x1d   : > { %v169_v13 = vadd.f32 129347.26, %v168_v11  ;;  %v184_v14 = vadd.f32 6769.0, %v183_v12  ;;  %v292_v31 = vpop.eup %291 }
  0x1e   : > { %v195_v36 = vmul.f32 0.6931472, %v292_v31 }
  0x1f   : > { %v170_v15 = vmul.f32 %v169_v13, %v157_v0  ;;  %v185_v16 = vmul.f32 %v184_v14, %v157_v0 }
  0x20   : > { %v196_v38 = vmul.f32 %v280_v35, %v195_v36 }
  0x21   : > { %v171_v17 = vadd.f32 678289.7, %v170_v15  ;;  %v186_v18 = vadd.f32 13132.0, %v185_v16 }
  0x22   : > { %v197_v40 = vadd.f32 0.9189385, %v196_v38 }
  0x23   : > { %v172_v19 = vmul.f32 %v171_v17, %v157_v0  ;;  %v187_v20 = vmul.f32 %v186_v18, %v157_v0 }
  0x24   : > { %v198_v43 = vsub.f32 %v197_v40, %v192_v23 }
  0x25   : > { %v173_v21 = vadd.f32 2222880.5, %v172_v19  ;;  %v188_v22 = vadd.f32 13068.0, %v187_v20 }
  0x27   : > { %v189_v24 = vmul.f32 %v188_v22, %v157_v0  ;;  %v174_v25 = vmul.f32 %v173_v21, %v157_v0 }
  0x29   : > { %v190_v26 = vadd.f32 5040.0, %v189_v24  ;;  %v175_v28 = vadd.f32 4162388.0, %v174_v25 }
  0x2b   : > { %v191_v27 = vmul.f32 %v190_v26, %v157_v0  ;;  %v176_v29 = vmul.f32 %v175_v28, %v157_v0 }
  0x2d   : > { %293 = vrcp.f32 %v191_v27  ;;  %v177_v33 = vadd.f32 3409662.8, %v176_v29 }
  0x2e   : > { %295 = vpow2.f32 %v159_v32 }
  0x37   : > { %v294_v34 = vpop.eup %293 }
  0x38   : > { %v200_v37 = vmul.f32 %v294_v34, %v177_v33  ;;  %v296_v42 = vpop.eup %295 }
  0x39   : > { %v162_v45 = vsub.f32 %v296_v42, %v161_v41 }
  0x3a   : > { %297 = vlog2.f32 %v200_v37 }
  0x44   : > { %v298_v44 = vpop.eup %297 }
  0x45   : > { %v202_v46 = vmul.f32 0.6931472, %v298_v44 }
  0x47   : > { %v203_v47 = vadd.f32 %v202_v46, %v198_v43 }
  0x49   : > { %v204_v48 = vadd.f32 %v203_v47, %v162_v45 }
  0x4b   : > { %205 = vst [vmem:[%s155_s20] sm:$0xff] %v204_v48 }
  0x4c PF: > { %s12_s9 = sadd.s32 1, %s305_s9  }
  0x4d   : > { %p9_p4 = scmp.ge.s32.totalorder %s12_s9, 4  }
  0x4f   :  { %11 = sbr.rel (!%p9_p4) target bundleno = 1 (0x1), region = 61 }

</bundles_post_ra>
